<compile_context>
chip_gen: v7x
topology: tpu7x:2x2x1
jax: 0.10.0
libtpu: 0.0.40
codegen_flags: <defaults>
</compile_context>

<pallas_src>
import jax
import jax.numpy as jnp
from jax.experimental import pallas as pl
from jax.experimental.pallas import tpu as pltpu

raw_text = (
    'We are about to study the idea of a computational process.\n'
    'Computational processes are abstract beings that inhabit computers.\n'
    'As they evolve, processes manipulate other abstract things called data.\n'
    'The evolution of a process is directed by a pattern of rules\n'
    'called a program. People create programs to direct processes. In effect,\n'
    'we conjure the spirits of the computer with our spells.'
).split()

vocab = sorted(set(raw_text))
VOCAB_SIZE = len(vocab)          # 49
EMBEDDING_DIM = 16
CONTEXT_SIZE = 2
N_CTX = 2 * CONTEXT_SIZE         # in_features of linear1

V_PAD = 128                      # vocab axis padded to one full lane tile
TB_MAX = 256                     # max contexts (rows) per grid step
NEG = jnp.float32(-1e30)         # bias pad value -> exp() underflows to exactly 0


def cbow_kernel(sums_ref, w_t_ref, b_ref, out_ref):
    """sums_ref: VMEM (TB, 2C) per-token embedding sums (gathered in the wrapper);
    w_t_ref: VMEM (2C, V_PAD) transposed+padded linear weight;
    b_ref:   VMEM (1, V_PAD) padded bias (-1e30 in pad lanes);
    out_ref: VMEM (TB, V_PAD) log-prob block for this grid step."""
    n_ctx = w_t_ref.shape[0]

    # Whole-tile rank-1 accumulation on the VPU:
    #   logits[b, v] = bias[v] + sum_i sums[b, i] * w_t[i, v]
    # 2C = 4 full-vreg broadcast FMAs per tile; exact f32.
    logits = b_ref[...] + sums_ref[:, 0:1] * w_t_ref[0:1, :]
    for i in range(1, n_ctx):                               # static unroll over context
        logits = logits + sums_ref[:, i:i + 1] * w_t_ref[i:i + 1, :]

    # log_softmax over the (padded) vocab lanes; padded lanes sit at ~-1e30 so they
    # neither win the max nor perturb the exp-sum.
    m = jnp.max(logits, axis=-1, keepdims=True)
    shifted = logits - m
    lse = jnp.log(jnp.sum(jnp.exp(shifted), axis=-1, keepdims=True))
    out_ref[...] = shifted - lse


def prepare_params(emb, w, b):
    """One-time (init) parameter prep, hoisted out of the per-call path:
    per-token embedding row-sums, transposed + vocab-padded linear weight, padded bias."""
    v, n_ctx = w.shape
    assert v <= V_PAD, "VOCAB_SIZE must fit in one padded lane tile (<=128)"
    emb_sums = jnp.sum(emb.astype(jnp.float32), axis=-1)     # (V,)  torch.sum(., dim=1)
    w_t_pad = jnp.zeros((n_ctx, V_PAD), jnp.float32).at[:, :v].set(w.T)
    bias_pad = jnp.full((1, V_PAD), NEG, jnp.float32).at[0, :v].set(b)
    return emb_sums, w_t_pad, bias_pad


@jax.jit
def cbow_forward(inputs, emb_sums, w_t_pad, bias_pad):
    """inputs: (2C,) or (B, 2C) int32 token ids; returns (B, V) log-probs
    (B == 1 reproduces the module's (1, V) output)."""
    inputs = jnp.asarray(inputs, jnp.int32)
    if inputs.ndim == 1:
        inputs = inputs[None, :]
    batch, n_ctx = inputs.shape

    # Tiny gather of precomputed per-token sums (done once, outside the kernel).
    sums = emb_sums[inputs]                                   # (B, 2C) float32

    # Batch tile: as large as possible up to TB_MAX, multiple of 8 sublanes.
    bp8 = ((batch + 7) // 8) * 8
    tb = min(TB_MAX, bp8)
    bp = ((batch + tb - 1) // tb) * tb
    if bp != batch:                                           # pad rows: zeros, sliced away
        sums = jnp.concatenate(
            [sums, jnp.zeros((bp - batch, n_ctx), sums.dtype)], axis=0)

    v_pad = w_t_pad.shape[1]

    out_pad = pl.pallas_call(
        cbow_kernel,
        out_shape=jax.ShapeDtypeStruct((bp, v_pad), jnp.float32),
        grid=(bp // tb,),
        in_specs=[
            pl.BlockSpec((tb, n_ctx), lambda g: (g, 0)),        # per-row sums
            pl.BlockSpec((n_ctx, v_pad), lambda g: (0, 0)),     # weight: VMEM resident
            pl.BlockSpec((1, v_pad), lambda g: (0, 0)),         # bias:   VMEM resident
        ],
        out_specs=pl.BlockSpec((tb, v_pad), lambda g: (g, 0)),  # lane-dense output
        compiler_params=pltpu.CompilerParams(
            dimension_semantics=("parallel",)),                 # batch axis -> megacore
    )(sums, w_t_pad, bias_pad)

    return out_pad[:batch, :VOCAB_SIZE]


if __name__ == "__main__":
    key = jax.random.PRNGKey(0)
    k_emb, k_w, k_b, k_idx = jax.random.split(key, 4)

    # Deterministic synthetic parameters (shapes from the module's __init__).
    emb = jax.random.normal(k_emb, (VOCAB_SIZE, EMBEDDING_DIM), dtype=jnp.float32)
    lim = 1.0 / (N_CTX ** 0.5)
    w = jax.random.uniform(k_w, (VOCAB_SIZE, N_CTX), minval=-lim, maxval=lim,
                           dtype=jnp.float32)
    b = jax.random.uniform(k_b, (VOCAB_SIZE,), minval=-lim, maxval=lim,
                           dtype=jnp.float32)

    # Hoisted once: embedding row-sums + transposed, vocab-padded linear parameters.
    emb_sums, w_t_pad, bias_pad = prepare_params(emb, w, b)

    # A batch of CBOW contexts (each row is one forward of the module).
    B = 12
    inputs = jax.random.randint(k_idx, (B, N_CTX), 0, VOCAB_SIZE, dtype=jnp.int32)

    out = jax.block_until_ready(cbow_forward(inputs, emb_sums, w_t_pad, bias_pad))

    # Pure-JAX reference of the exact PyTorch semantics, applied per row.
    embeds_ref = emb[inputs]                                   # (B, 2C, D)
    sum_ref = jnp.sum(embeds_ref, axis=2)                      # (B, 2C)
    fc1_ref = jnp.dot(sum_ref, w.T,
                      precision=jax.lax.Precision.HIGHEST) + b  # (B, V)
    ref = jax.nn.log_softmax(fc1_ref, axis=-1)                  # (B, V)
    assert out.shape == (B, VOCAB_SIZE)
    assert jnp.allclose(out, ref, atol=1e-4), "kernel/reference mismatch (batched)"

    # Single-context call reproduces the module's (1, V) output.
    out1 = jax.block_until_ready(cbow_forward(inputs[0], emb_sums, w_t_pad, bias_pad))
    assert out1.shape == (1, VOCAB_SIZE)
    assert jnp.allclose(out1, ref[0:1], atol=1e-4), "kernel/reference mismatch (single)"

    print("KERNEL_OK")
</pallas_src>

<mosaic_0001>
module attributes {stable_mosaic.version = 11 : i64} {
  func.func @cbow_kernel(%arg0: i32, %arg1: memref<16x4xf32, #tpu.memory_space<vmem>>, %arg2: memref<4x128xf32, #tpu.memory_space<vmem>>, %arg3: memref<1x128xf32, #tpu.memory_space<vmem>>, %arg4: memref<16x128xf32, #tpu.memory_space<vmem>>) attributes {dimension_semantics = [#tpu.dimension_semantics<parallel>], iteration_bounds = array<i64: 1>, scalar_prefetch = 0 : i64, scratch_operands = 0 : i64, tpu.core_type = #tpu.core_type<tc>, window_params = [{transform_indices = @transform_0, window_bounds = array<i64: 16, 4>}, {pipeline_mode = #tpu.pipeline_mode<synchronous>, transform_indices = @transform_1, window_bounds = array<i64: 4, 128>}, {pipeline_mode = #tpu.pipeline_mode<synchronous>, transform_indices = @transform_2, window_bounds = array<i64: 1, 128>}, {transform_indices = @transform_3, window_bounds = array<i64: 16, 128>}]} {
    %c0 = arith.constant 0 : index
    %c0_0 = arith.constant 0 : index
    %0 = vector.load %arg3[%c0, %c0_0] : memref<1x128xf32, #tpu.memory_space<vmem>>, vector<1x128xf32>
    %c0_1 = arith.constant 0 : index
    %c0_2 = arith.constant 0 : index
    %1 = vector.load %arg1[%c0_1, %c0_2] : memref<16x4xf32, #tpu.memory_space<vmem>>, vector<16x1xf32>
    %c0_3 = arith.constant 0 : index
    %c0_4 = arith.constant 0 : index
    %2 = vector.load %arg2[%c0_3, %c0_4] : memref<4x128xf32, #tpu.memory_space<vmem>>, vector<1x128xf32>
    %3 = vector.broadcast %1 : vector<16x1xf32> to vector<16x128xf32>
    %4 = vector.broadcast %2 : vector<1x128xf32> to vector<16x128xf32>
    %5 = arith.mulf %3, %4 : vector<16x128xf32>
    %6 = vector.broadcast %0 : vector<1x128xf32> to vector<16x128xf32>
    %7 = arith.addf %6, %5 : vector<16x128xf32>
    %c0_5 = arith.constant 0 : index
    %c1 = arith.constant 1 : index
    %8 = vector.load %arg1[%c0_5, %c1] : memref<16x4xf32, #tpu.memory_space<vmem>>, vector<16x1xf32>
    %c1_6 = arith.constant 1 : index
    %c0_7 = arith.constant 0 : index
    %9 = vector.load %arg2[%c1_6, %c0_7] : memref<4x128xf32, #tpu.memory_space<vmem>>, vector<1x128xf32>
    %10 = vector.broadcast %8 : vector<16x1xf32> to vector<16x128xf32>
    %11 = vector.broadcast %9 : vector<1x128xf32> to vector<16x128xf32>
    %12 = arith.mulf %10, %11 : vector<16x128xf32>
    %13 = arith.addf %7, %12 : vector<16x128xf32>
    %c0_8 = arith.constant 0 : index
    %c2 = arith.constant 2 : index
    %14 = vector.load %arg1[%c0_8, %c2] : memref<16x4xf32, #tpu.memory_space<vmem>>, vector<16x1xf32>
    %c2_9 = arith.constant 2 : index
    %c0_10 = arith.constant 0 : index
    %15 = vector.load %arg2[%c2_9, %c0_10] : memref<4x128xf32, #tpu.memory_space<vmem>>, vector<1x128xf32>
    %16 = vector.broadcast %14 : vector<16x1xf32> to vector<16x128xf32>
    %17 = vector.broadcast %15 : vector<1x128xf32> to vector<16x128xf32>
    %18 = arith.mulf %16, %17 : vector<16x128xf32>
    %19 = arith.addf %13, %18 : vector<16x128xf32>
    %c0_11 = arith.constant 0 : index
    %c3 = arith.constant 3 : index
    %20 = vector.load %arg1[%c0_11, %c3] : memref<16x4xf32, #tpu.memory_space<vmem>>, vector<16x1xf32>
    %c3_12 = arith.constant 3 : index
    %c0_13 = arith.constant 0 : index
    %21 = vector.load %arg2[%c3_12, %c0_13] : memref<4x128xf32, #tpu.memory_space<vmem>>, vector<1x128xf32>
    %22 = vector.broadcast %20 : vector<16x1xf32> to vector<16x128xf32>
    %23 = vector.broadcast %21 : vector<1x128xf32> to vector<16x128xf32>
    %24 = arith.mulf %22, %23 : vector<16x128xf32>
    %25 = arith.addf %19, %24 : vector<16x128xf32>
    %cst = arith.constant dense<0xFF800000> : vector<16xf32>
    %26 = vector.multi_reduction <maximumf>, %25, %cst [1] : vector<16x128xf32> to vector<16xf32>
    %27 = vector.shape_cast %26 : vector<16xf32> to vector<16x1xf32>
    %28 = vector.broadcast %27 : vector<16x1xf32> to vector<16x128xf32>
    %29 = arith.subf %25, %28 : vector<16x128xf32>
    %30 = math.exp %29 : vector<16x128xf32>
    %cst_14 = arith.constant dense<0.000000e+00> : vector<16xf32>
    %31 = vector.multi_reduction <add>, %30, %cst_14 [1] : vector<16x128xf32> to vector<16xf32>
    %32 = vector.shape_cast %31 : vector<16xf32> to vector<16x1xf32>
    %33 = math.log %32 : vector<16x1xf32>
    %34 = vector.broadcast %33 : vector<16x1xf32> to vector<16x128xf32>
    %35 = arith.subf %29, %34 : vector<16x128xf32>
    %c0_15 = arith.constant 0 : index
    %c0_16 = arith.constant 0 : index
    %36 = vector.load %arg4[%c0_15, %c0_16] : memref<16x128xf32, #tpu.memory_space<vmem>>, vector<16x128xf32>
    tpu.vector_store %arg4[%c0_15, %c0_16], %35 {strides = array<i32>} : memref<16x128xf32, #tpu.memory_space<vmem>>, vector<16x128xf32>,
    return
  }
  func.func @transform_0(%arg0: i32) -> (i32, i32) {
    %c0_i32 = arith.constant 0 : i32
    %c0_i32_0 = arith.constant 0 : i32
    return %arg0, %c0_i32 : i32, i32
  }
  func.func @transform_1(%arg0: i32) -> (i32, i32) {
    %c0_i32 = arith.constant 0 : i32
    %c0_i32_0 = arith.constant 0 : i32
    %c0_i32_1 = arith.constant 0 : i32
    return %c0_i32, %c0_i32_0 : i32, i32
  }
  func.func @transform_2(%arg0: i32) -> (i32, i32) {
    %c0_i32 = arith.constant 0 : i32
    %c0_i32_0 = arith.constant 0 : i32
    %c0_i32_1 = arith.constant 0 : i32
    return %c0_i32, %c0_i32_0 : i32, i32
  }
  func.func @transform_3(%arg0: i32) -> (i32, i32) {
    %c0_i32 = arith.constant 0 : i32
    %c0_i32_0 = arith.constant 0 : i32
    return %arg0, %c0_i32 : i32, i32
  }
}

</mosaic_0001>

<bundles_post_ra>
// kernel: cbow_forward.1
= control target key start
LH: loop header
LB: loop body
LE: loop exit
PB: predicated region body
PF: predicated region fallthrough
CT: control target
= control target key end

     0   :  { %v182_v1 = vmov 1   ;;  %v183_v2 = vmov 0   ;;  %s242_s0 = inlined_call_operand.vmem [shape: f32[16,4], index: 0, kind: input, shape index: {}]   ;;  %s243_s1 = inlined_call_operand.vmem [shape: f32[4,128], index: 1, kind: input, shape index: {}]   ;;  %s244_s2 = inlined_call_operand.vmem [shape: f32[1,128], index: 2, kind: input, shape index: {}]   ;;  %s245_s3 = inlined_call_operand.hbm [shape: f32[16,128], index: 3, kind: output, shape index: {}]  }
   0x1   :  { %v16_v0 = vld [vmem:[%s242_s0] sm:$0xff]  ;;  %145 = vset.pattern.permute.xlu1 %v182_v1  ;;  %144 = vset.pattern.permute.xlu0 %v183_v2 }
   0x2   :  { %8 = vsyncpa [#allocation3], 0  ;;  %45 = vperm.xlu1 %145, %v16_v0   ;;  %21 = vperm.xlu0 %144, %v16_v0   ;;  %v17_v3 = vld [vmem:[%s242_s0 + $0x8] sm:$0xff]  ;;  %v184_v4 = vmov 2   ;;  %v185_v5 = vmov 3  }
   0x3   :  { %v132_v8 = vld [vmem:[%s243_s1] ss:$0 sm:$0xff]  ;;  %v134_v15 = vld [vmem:[%s243_s1 + $0x1] ss:$0 sm:$0xff]  ;;  %v135_v16 = vld [vmem:[%s243_s1 + $0x2] ss:$0 sm:$0xff] }
   0x4   :  { %v133_v13 = vld [vmem:[%s244_s2] ss:$0 sm:$0xff]  ;;  %v136_v25 = vld [vmem:[%s243_s1 + $0x3] ss:$0 sm:$0xff]  ;;  %s186_s1 = smov [#allocation2]  }
   0x5   :  { %s121_s2 = sshll.u32 %s186_s1, 4  ;;  %s122_s2 = int_to_ptr.vmem [resolvable:$true] %s121_s2 }
   0x6   :  { %49 = vperm.xlu1 %145, %v17_v3   ;;  %26 = vperm.xlu0 %144, %v17_v3   ;;  %s158_s25 = scalar_lea.vmem %s122_s2, 256  ;;  %p163_p1 = scmp.lt.s32.totalorder %s122_s2, %s122_s2 }
   0x7   :  { %p159_p0 = scmp.ne.s32.totalorder %s122_s2, %s158_s25  ;;  %p164_p2 = scmp.lt.s32.totalorder %s158_s25, %s158_s25 }
   0x9   :  { %p165_p3 = por %p164_p2, %p163_p1 }
   0xa   :  { %147 = vset.pattern.permute.xlu1 %v184_v4  ;;  %146 = vset.pattern.permute.xlu0 %v184_v4 }
   0xb   :  { %66 = vperm.xlu1 %147, %v17_v3   ;;  %62 = vperm.xlu0 %146, %v16_v0   ;;  %p166_p4 = pnand %p165_p3, %p159_p0 }
   0xf   :  { %148 = vset.pattern.permute.xlu1 %v185_v5  ;;  %149 = vset.pattern.permute.xlu0 %v185_v5 }
  0x10   :  { %79 = vperm.xlu1 %148, %v16_v0   ;;  %83 = vperm.xlu0 %149, %v17_v3  }
  0x81   :  { %v46_v6 = vpop.permute.xlu1 %45  ;;  %v22_v7 = vpop.permute.xlu0 %21 }
  0x82   :  { %v33_v11 = vmul.f32 %v132_v8, %v22_v7  ;;  %v56_v21 = vmul.f32 %v134_v15, %v46_v6 }
  0x84   :  { %v41_v17 = vadd.f32 %v133_v13, %v33_v11 }
  0x85   :  { %v50_v9 = vpop.permute.xlu1 %49  ;;  %v27_v10 = vpop.permute.xlu0 %26 }
  0x86   :  { %v34_v12 = vmul.f32 %v132_v8, %v27_v10  ;;  %v57_v18 = vmul.f32 %v134_v15, %v50_v9  ;;  %v58_v26 = vadd.f32 %v56_v21, %v41_v17 }
  0x88   :  { %v42_v14 = vadd.f32 %v133_v13, %v34_v12 }
  0x8a   :  { %v67_v19 = vpop.permute.xlu1 %66  ;;  %v63_v20 = vpop.permute.xlu0 %62  ;;  %v59_v22 = vadd.f32 %v57_v18, %v42_v14 }
  0x8b   :  { %v74_v23 = vmul.f32 %v135_v16, %v67_v19  ;;  %v73_v24 = vmul.f32 %v135_v16, %v63_v20 }
  0x8d   :  { %v76_v29 = vadd.f32 %v74_v23, %v59_v22  ;;  %v75_v30 = vadd.f32 %v73_v24, %v58_v26 }
  0x8f   :  { %v80_v27 = vpop.permute.xlu1 %79  ;;  %v84_v28 = vpop.permute.xlu0 %83 }
  0x90   :  { %v90_v31 = vmul.f32 %v136_v25, %v80_v27  ;;  %v91_v32 = vmul.f32 %v136_v25, %v84_v28 }
  0x92   :  { %v93_v33 = vadd.f32 %v91_v32, %v76_v29  ;;  %v92_v34 = vadd.f32 %v90_v31, %v75_v30 }
  0x94   :  { %96 = vmax.xlane.f32.xlu0 %v93_v33  ;;  %94 = vmax.xlane.f32.xlu1 %v92_v34 }
 0x121   :  { %v97_v35 = vpop.xlane.xlu0 %96  ;;  %v95_v36 = vpop.xlane.xlu1 %94 }
 0x122   :  { %v99_v37 = vsub.f32 %v93_v33, %v97_v35  ;;  %v98_v38 = vsub.f32 %v92_v34, %v95_v36 }
 0x124   :  { %v102_v39 = vmul.f32 1.442695, %v99_v37  ;;  %v100_v40 = vmul.f32 1.442695, %v98_v38 }
 0x126   :  { %150 = vpow2.f32 %v102_v39 }
 0x127   :  { %152 = vpow2.f32 %v100_v40 }
 0x130   :  { %v151_v41 = vpop.eup %150 }
 0x131   :  { %v153_v42 = vpop.eup %152  ;;  %106 = vadd.xlane.f32.xlu0 %v151_v41 }
 0x132   :  { %104 = vadd.xlane.f32.xlu1 %v153_v42 }
 0x1be   :  { %v107_v43 = vpop.xlane.xlu0 %106 }
 0x1bf   :  { %154 = vlog2.f32 %v107_v43  ;;  %v105_v44 = vpop.xlane.xlu1 %104 }
 0x1c0   :  { %156 = vlog2.f32 %v105_v44 }
 0x1c9   :  { %v155_v45 = vpop.eup %154 }
 0x1ca   :  { %v157_v46 = vpop.eup %156  ;;  %v111_v47 = vmul.f32 0.6931472, %v155_v45 }
 0x1cb   :  { %v109_v48 = vmul.f32 0.6931472, %v157_v46 }
 0x1cc   :  { %v113_v49 = vsub.f32 %v99_v37, %v111_v47 }
 0x1cd   :  { %v112_v50 = vsub.f32 %v98_v38, %v109_v48 }
 0x1ce   :  { %115 = vst [vmem:[#allocation2 + $0x8] sm:$0xff] %v113_v49 }
 0x1cf   :  { %114 = vst [vmem:[#allocation2] sm:$0xff] %v112_v50 }
 0x1d0   :  { %169 = shalt.err (!%p166_p4)
}
 0x1d1   :  { %s170_s28 = scalar_lea.hbm %s245_s3, 256 }
 0x1d2   :  { %p171_p5 = scmp.ne.s32.totalorder %s245_s3, %s170_s28  ;;  %p174_p6 = scmp.lt.u32.totalorder %s170_s28, %s245_s3 }
 0x1d4   :  { %p176_p7 = pnand %p174_p6, %p171_p5 }
 0x1d6   :  { %179 = shalt.err (!%p176_p7)
}
 0x1d7   :  { %s187_s6 = smov 128   ;;  %s188_s7 = smov 8  }
 0x1d8   :  { %127 = dma.vmem_to_hbm [thread:$0]  %s122_s2, 256, %s245_s3, [#allocation3], %s187_s6, %s187_s6, %s188_s7  }
 0x1d9   :  { %180 = dma.done.wait [#allocation3], 256  }
 0x1da   :  { %181 = vsyncadd [#allocation3], 4294967040 }
 0x1db   :  { %131 = vsyncpa [#allocation3], 1 }

</bundles_post_ra>
